<compile_context>
chip_gen: v6e
topology: v6e:2x2x1
jax: 0.10.0
libtpu: 0.0.40
codegen_flags: <defaults>
</compile_context>

<pallas_src>
import functools

import jax
import jax.numpy as jnp
from jax import lax
from jax.experimental import pallas as pl
from jax.experimental.pallas import tpu as pltpu

NEG_SLOPE = 0.01  # torch.nn.functional.leaky_relu default


def _implicit_kernel(num_layers, x_ref, sel_ref, *refs):
    """refs = (w0, b0, w1, b1, ..., w_{L-1}, b_{L-1}, out_ref).

    x_ref:   (TM, p*in_size)          compute dtype (bf16/f32), p rows packed per row
    sel_ref: (p, p*out_size)          f32 selector: row k is 1 on segment k, else 0
    w_l:     (p*d_in_l, p*out_size)   block-diagonal weights, compute dtype
    b_l:     (1, p*out_size)          f32 bias, tiled p times
    out_ref: (p*L, TM)                f32; rows [p*l, p*l+p) = layer-l per-row sums
    """
    out_ref = refs[-1]
    sel = sel_ref[...]
    h = x_ref[...]
    sums = []
    for l in range(num_layers):
        w = refs[2 * l][...]
        b = refs[2 * l + 1][...]
        # Block-diagonal matmul: K = N = p*out_size lanes keep the MXU dense.
        h = jnp.dot(h.astype(w.dtype), w, preferred_element_type=jnp.float32) + b
        h = jnp.maximum(h, NEG_SLOPE * h)              # leaky_relu: 2 VPU ops
        # Per-packed-row feature sums on the (otherwise idle) MXU; the NT
        # dot_general yields a lane-dense (p, TM) block directly -- no XLU
        # reduce, transpose or concat relayout of the big operand.
        sums.append(lax.dot_general(sel, h, (((1,), (1,)), ((), ())),
                                    preferred_element_type=jnp.float32))
    out_ref[...] = jnp.concatenate(sums, axis=0)       # single (p*L, TM) store


def _round_up(n, m):
    return ((n + m - 1) // m) * m


def _cdiv(a, b):
    return (a + b - 1) // b


def _default_vmem_budget():
    # ~3/4 of physical VMEM: ~96 MiB on v5e/v6e (128 MiB), ~48 MiB on v7x (64 MiB).
    try:
        cap = int(pltpu.get_tpu_info().vmem_capacity_bytes)
    except Exception:
        cap = 64 << 20
    return cap * 3 // 4


def implicit_component(x, weights, biases, *, tm=4096,
                       compute_dtype=jnp.bfloat16,
                       vmem_budget_bytes=None):
    """x: (B, S, in_size); weights[l]: (d_in_l, out_size) (transposed); biases[l]: (out_size,)."""
    B, S, in_size = x.shape
    L = len(weights)
    out_size = weights[0].shape[1]
    M = B * S
    compute_dtype = jnp.dtype(compute_dtype)
    cd = compute_dtype.itemsize
    if vmem_budget_bytes is None:
        vmem_budget_bytes = _default_vmem_budget()

    # ---- lane packing: p original rows share one 128-lane packed row --------
    p = max(1, 128 // max(in_size, out_size))
    pin, pout = p * in_size, p * out_size
    M1 = _round_up(M, p)
    Mrows = M1 // p                                     # packed-row count

    # ---- row-tile selection: grow to fill the VMEM budget, then cap ---------
    def vmem_estimate(tile):
        est = 2 * tile * pin * cd                       # x tile, double-buffered
        est += 2 * p * L * tile * 4                     # f32 output slab, double-buffered
        d_in = pin
        for _ in range(L):                              # resident params (x2 pipeline bufs)
            est += 2 * (d_in * pout * cd + pout * 4)
            d_in = pout
        est += 2 * p * pout * 4                         # selector
        est += tile * pout * (4 + cd)                   # live f32 h + one cast copy
        return est

    TM_MAX = 8192
    tm = max(128, _round_up(int(tm), 128))
    while tm * 2 <= TM_MAX and vmem_estimate(tm * 2) <= vmem_budget_bytes:
        tm *= 2                                         # grow to fill the budget
    while vmem_estimate(tm) > vmem_budget_bytes and tm > 128:
        tm -= 128
    # v7x megacore: keep >= 2 "parallel" grid steps once there is enough work.
    if Mrows > 512:
        tm = min(tm, max(128, _round_up(_cdiv(Mrows, 2), 128)))
    if Mrows <= tm:
        tm = _round_up(max(Mrows, 8), 8)                # single full block
    Mp_rows = _round_up(Mrows, tm)
    grid = Mp_rows // tm

    # ---- prepare inputs ------------------------------------------------------
    x2 = x.reshape(M, in_size)
    if compute_dtype != jnp.dtype(x.dtype):
        x2 = x2.astype(compute_dtype)                   # halves the only big HBM stream
    if M1 != M:
        x2 = jnp.pad(x2, ((0, M1 - M), (0, 0)))
    xp = x2.reshape(Mrows, pin)                         # row-major: p rows per packed row
    if Mp_rows != Mrows:
        # TODO(synk): padded rows run leaky_relu(bias) through every layer before
        # being sliced off -- correct but wasted work when padding ~ a full tile.
        xp = jnp.pad(xp, ((0, Mp_rows - Mrows), (0, 0)))

    eye_p = jnp.eye(p, dtype=jnp.float32)
    sel = jnp.kron(eye_p, jnp.ones((1, out_size), jnp.float32))       # (p, pout)

    kernel = functools.partial(_implicit_kernel, L)
    in_specs = [pl.BlockSpec((tm, pin), lambda i: (i, 0)),
                pl.BlockSpec((p, pout), lambda i: (0, 0))]            # resident
    args = [xp, sel]
    for w, b in zip(weights, biases):
        w_bd = jnp.kron(eye_p, w.astype(jnp.float32)).astype(compute_dtype)
        b_t = jnp.tile(b.astype(jnp.float32), p).reshape(1, pout)
        # Constant index_maps: params are DMA'd once and stay resident in VMEM.
        in_specs.append(pl.BlockSpec(w_bd.shape, lambda i: (0, 0)))
        in_specs.append(pl.BlockSpec((1, pout), lambda i: (0, 0)))
        args += [w_bd, b_t]

    vmem_limit = int(min(max(2 * vmem_estimate(tm), 16 << 20), vmem_budget_bytes))

    out = pl.pallas_call(
        kernel,
        grid=(grid,),
        in_specs=in_specs,
        out_specs=pl.BlockSpec((p * L, tm), lambda i: (0, i)),        # lane-dense slab
        out_shape=jax.ShapeDtypeStruct((p * L, Mp_rows), jnp.float32),
        compiler_params=pltpu.CompilerParams(
            dimension_semantics=("parallel",),                        # megacore row split
            vmem_limit_bytes=vmem_limit),
    )(*args)

    # ---- un-interleave the (p*L, Mp_rows) slab back to (B, L*S) --------------
    out = out.reshape(L, p, Mp_rows)
    out = jnp.transpose(out, (0, 2, 1)).reshape(L, Mp_rows * p)[:, :M]  # (L, M)
    out = out.reshape(L, B, S)
    out = jnp.transpose(out, (1, 0, 2)).reshape(B, L * S)              # layer-major concat
    return out.astype(x.dtype)


def _reference(x, weights, biases):
    """Pure-JAX reference mirroring the PyTorch forward (f32 throughout)."""
    interactions = []
    xi = x
    for w, b in zip(weights, biases):
        xi = jnp.einsum("bsi,io->bso", xi, w) + b
        xi = jnp.where(xi >= 0, xi, NEG_SLOPE * xi)
        interactions.append(jnp.sum(xi, axis=2))
    return jnp.concatenate(interactions, axis=1)


def _init_params(key, in_size, out_size, num_layers):
    """nn.Linear-shaped params (weights stored transposed: (d_in, d_out))."""
    weights, biases = [], []
    d_in = in_size
    for _ in range(num_layers):
        key, kw, kb = jax.random.split(key, 3)
        bound = 1.0 / jnp.sqrt(d_in)
        weights.append(jax.random.uniform(kw, (d_in, out_size), jnp.float32, -bound, bound))
        biases.append(jax.random.uniform(kb, (out_size,), jnp.float32, -bound, bound))
        d_in = out_size
    return weights, biases


if __name__ == "__main__":
    in_size, out_size, num_layers = 32, 32, 3
    weights, biases = _init_params(jax.random.PRNGKey(0), in_size, out_size, num_layers)

    # Small shape consistent with the module (B=2, S=8, hidden=32):
    # single-block path, f32 compute for a tight numerical check.
    B, S = 2, 8
    x = jax.random.normal(jax.random.PRNGKey(0), (B, S, in_size), jnp.float32)
    out = jax.block_until_ready(
        implicit_component(x, weights, biases, compute_dtype=jnp.float32))
    ref = _reference(x, weights, biases)
    assert out.shape == (B, num_layers * S), out.shape
    assert jnp.allclose(out, ref, atol=2e-2, rtol=1e-2), float(jnp.max(jnp.abs(out - ref)))

    # Larger shape: default bf16 path, grid >= 2 (megacore split) + row padding.
    B2, S2 = 4, 2049                      # M = 8196 -> 2049 packed rows -> grid = 2
    xl = jax.random.normal(jax.random.PRNGKey(1), (B2, S2, in_size), jnp.float32)
    out2 = jax.block_until_ready(implicit_component(xl, weights, biases))
    # Compare against a reference fed the same bf16-rounded x / weights so the
    # remaining difference is only f32-intermediate / accumulation rounding.
    xq = xl.astype(jnp.bfloat16).astype(jnp.float32)
    wq = [w.astype(jnp.bfloat16).astype(jnp.float32) for w in weights]
    ref2 = _reference(xq, wq, biases)
    assert out2.shape == (B2, num_layers * S2), out2.shape
    assert jnp.allclose(out2, ref2, atol=5e-2, rtol=5e-2), float(jnp.max(jnp.abs(out2 - ref2)))

    print("KERNEL_OK")
</pallas_src>

<mosaic_0001>
module attributes {stable_mosaic.version = 11 : i64} {
  func.func @_implicit_kernel(%arg0: i32, %arg1: memref<8x128xf32, #tpu.memory_space<vmem>>, %arg2: memref<4x128xf32, #tpu.memory_space<vmem>>, %arg3: memref<128x128xf32, #tpu.memory_space<vmem>>, %arg4: memref<1x128xf32, #tpu.memory_space<vmem>>, %arg5: memref<128x128xf32, #tpu.memory_space<vmem>>, %arg6: memref<1x128xf32, #tpu.memory_space<vmem>>, %arg7: memref<128x128xf32, #tpu.memory_space<vmem>>, %arg8: memref<1x128xf32, #tpu.memory_space<vmem>>, %arg9: memref<12x8xf32, #tpu.memory_space<vmem>>) attributes {dimension_semantics = [#tpu.dimension_semantics<parallel>], iteration_bounds = array<i64: 1>, scalar_prefetch = 0 : i64, scratch_operands = 0 : i64, tpu.core_type = #tpu.core_type<tc>, window_params = [{transform_indices = @transform_0, window_bounds = array<i64: 8, 128>}, {pipeline_mode = #tpu.pipeline_mode<synchronous>, transform_indices = @transform_1, window_bounds = array<i64: 4, 128>}, {pipeline_mode = #tpu.pipeline_mode<synchronous>, transform_indices = @transform_2, window_bounds = array<i64: 128, 128>}, {pipeline_mode = #tpu.pipeline_mode<synchronous>, transform_indices = @transform_3, window_bounds = array<i64: 1, 128>}, {pipeline_mode = #tpu.pipeline_mode<synchronous>, transform_indices = @transform_4, window_bounds = array<i64: 128, 128>}, {pipeline_mode = #tpu.pipeline_mode<synchronous>, transform_indices = @transform_5, window_bounds = array<i64: 1, 128>}, {pipeline_mode = #tpu.pipeline_mode<synchronous>, transform_indices = @transform_6, window_bounds = array<i64: 128, 128>}, {pipeline_mode = #tpu.pipeline_mode<synchronous>, transform_indices = @transform_7, window_bounds = array<i64: 1, 128>}, {transform_indices = @transform_8, window_bounds = array<i64: 12, 8>}]} {
    %c0 = arith.constant 0 : index
    %c0_0 = arith.constant 0 : index
    %0 = vector.load %arg2[%c0, %c0_0] : memref<4x128xf32, #tpu.memory_space<vmem>>, vector<4x128xf32>
    %c0_1 = arith.constant 0 : index
    %c0_2 = arith.constant 0 : index
    %1 = vector.load %arg1[%c0_1, %c0_2] : memref<8x128xf32, #tpu.memory_space<vmem>>, vector<8x128xf32>
    %c0_3 = arith.constant 0 : index
    %c0_4 = arith.constant 0 : index
    %2 = vector.load %arg3[%c0_3, %c0_4] : memref<128x128xf32, #tpu.memory_space<vmem>>, vector<128x128xf32>
    %c0_5 = arith.constant 0 : index
    %c0_6 = arith.constant 0 : index
    %3 = vector.load %arg4[%c0_5, %c0_6] : memref<1x128xf32, #tpu.memory_space<vmem>>, vector<1x128xf32>
    %cst = arith.constant dense<0.000000e+00> : vector<8x128xf32>
    %4 = tpu.matmul %1, %2, %cst {dimension_numbers = #tpu.dot_dimension_numbers<[1], [0], [0], [1], [0, 0, 1, 1], [], []>} : vector<8x128xf32>, vector<128x128xf32>, vector<8x128xf32> -> vector<8x128xf32>
    %5 = vector.broadcast %3 : vector<1x128xf32> to vector<8x128xf32>
    %6 = arith.addf %4, %5 : vector<8x128xf32>
    %cst_7 = arith.constant 0.00999999977 : f32
    %7 = vector.broadcast %cst_7 : f32 to vector<8x128xf32>
    %8 = arith.mulf %7, %6 : vector<8x128xf32>
    %9 = arith.maximumf %6, %8 : vector<8x128xf32>
    %cst_8 = arith.constant dense<0.000000e+00> : vector<4x8xf32>
    %10 = tpu.matmul %0, %9, %cst_8 {dimension_numbers = #tpu.dot_dimension_numbers<[1], [1], [0], [0], [0, 0, 1, 0], [], []>} : vector<4x128xf32>, vector<8x128xf32>, vector<4x8xf32> -> vector<4x8xf32>
    %c0_9 = arith.constant 0 : index
    %c0_10 = arith.constant 0 : index
    %11 = vector.load %arg5[%c0_9, %c0_10] : memref<128x128xf32, #tpu.memory_space<vmem>>, vector<128x128xf32>
    %c0_11 = arith.constant 0 : index
    %c0_12 = arith.constant 0 : index
    %12 = vector.load %arg6[%c0_11, %c0_12] : memref<1x128xf32, #tpu.memory_space<vmem>>, vector<1x128xf32>
    %cst_13 = arith.constant dense<0.000000e+00> : vector<8x128xf32>
    %13 = tpu.matmul %9, %11, %cst_13 {dimension_numbers = #tpu.dot_dimension_numbers<[1], [0], [0], [1], [0, 0, 1, 1], [], []>} : vector<8x128xf32>, vector<128x128xf32>, vector<8x128xf32> -> vector<8x128xf32>
    %14 = vector.broadcast %12 : vector<1x128xf32> to vector<8x128xf32>
    %15 = arith.addf %13, %14 : vector<8x128xf32>
    %cst_14 = arith.constant 0.00999999977 : f32
    %16 = vector.broadcast %cst_14 : f32 to vector<8x128xf32>
    %17 = arith.mulf %16, %15 : vector<8x128xf32>
    %18 = arith.maximumf %15, %17 : vector<8x128xf32>
    %cst_15 = arith.constant dense<0.000000e+00> : vector<4x8xf32>
    %19 = tpu.matmul %0, %18, %cst_15 {dimension_numbers = #tpu.dot_dimension_numbers<[1], [1], [0], [0], [0, 0, 1, 0], [], []>} : vector<4x128xf32>, vector<8x128xf32>, vector<4x8xf32> -> vector<4x8xf32>
    %c0_16 = arith.constant 0 : index
    %c0_17 = arith.constant 0 : index
    %20 = vector.load %arg7[%c0_16, %c0_17] : memref<128x128xf32, #tpu.memory_space<vmem>>, vector<128x128xf32>
    %c0_18 = arith.constant 0 : index
    %c0_19 = arith.constant 0 : index
    %21 = vector.load %arg8[%c0_18, %c0_19] : memref<1x128xf32, #tpu.memory_space<vmem>>, vector<1x128xf32>
    %cst_20 = arith.constant dense<0.000000e+00> : vector<8x128xf32>
    %22 = tpu.matmul %18, %20, %cst_20 {dimension_numbers = #tpu.dot_dimension_numbers<[1], [0], [0], [1], [0, 0, 1, 1], [], []>} : vector<8x128xf32>, vector<128x128xf32>, vector<8x128xf32> -> vector<8x128xf32>
    %23 = vector.broadcast %21 : vector<1x128xf32> to vector<8x128xf32>
    %24 = arith.addf %22, %23 : vector<8x128xf32>
    %cst_21 = arith.constant 0.00999999977 : f32
    %25 = vector.broadcast %cst_21 : f32 to vector<8x128xf32>
    %26 = arith.mulf %25, %24 : vector<8x128xf32>
    %27 = arith.maximumf %24, %26 : vector<8x128xf32>
    %cst_22 = arith.constant dense<0.000000e+00> : vector<4x8xf32>
    %28 = tpu.matmul %0, %27, %cst_22 {dimension_numbers = #tpu.dot_dimension_numbers<[1], [1], [0], [0], [0, 0, 1, 0], [], []>} : vector<4x128xf32>, vector<8x128xf32>, vector<4x8xf32> -> vector<4x8xf32>
    %29 = tpu.concatenate %10, %19, %28 in 0 : vector<4x8xf32>, vector<4x8xf32>, vector<4x8xf32> -> vector<12x8xf32>
    %c0_23 = arith.constant 0 : index
    %c0_24 = arith.constant 0 : index
    %30 = vector.load %arg9[%c0_23, %c0_24] : memref<12x8xf32, #tpu.memory_space<vmem>>, vector<12x8xf32>
    tpu.vector_store %arg9[%c0_23, %c0_24], %29 {strides = array<i32>} : memref<12x8xf32, #tpu.memory_space<vmem>>, vector<12x8xf32>,
    return
  }
  func.func @transform_0(%arg0: i32) -> (i32, i32) {
    %c0_i32 = arith.constant 0 : i32
    %c0_i32_0 = arith.constant 0 : i32
    return %arg0, %c0_i32 : i32, i32
  }
  func.func @transform_1(%arg0: i32) -> (i32, i32) {
    %c0_i32 = arith.constant 0 : i32
    %c0_i32_0 = arith.constant 0 : i32
    %c0_i32_1 = arith.constant 0 : i32
    return %c0_i32, %c0_i32_0 : i32, i32
  }
  func.func @transform_2(%arg0: i32) -> (i32, i32) {
    %c0_i32 = arith.constant 0 : i32
    %c0_i32_0 = arith.constant 0 : i32
    %c0_i32_1 = arith.constant 0 : i32
    return %c0_i32, %c0_i32_0 : i32, i32
  }
  func.func @transform_3(%arg0: i32) -> (i32, i32) {
    %c0_i32 = arith.constant 0 : i32
    %c0_i32_0 = arith.constant 0 : i32
    %c0_i32_1 = arith.constant 0 : i32
    return %c0_i32, %c0_i32_0 : i32, i32
  }
  func.func @transform_4(%arg0: i32) -> (i32, i32) {
    %c0_i32 = arith.constant 0 : i32
    %c0_i32_0 = arith.constant 0 : i32
    %c0_i32_1 = arith.constant 0 : i32
    return %c0_i32, %c0_i32_0 : i32, i32
  }
  func.func @transform_5(%arg0: i32) -> (i32, i32) {
    %c0_i32 = arith.constant 0 : i32
    %c0_i32_0 = arith.constant 0 : i32
    %c0_i32_1 = arith.constant 0 : i32
    return %c0_i32, %c0_i32_0 : i32, i32
  }
  func.func @transform_6(%arg0: i32) -> (i32, i32) {
    %c0_i32 = arith.constant 0 : i32
    %c0_i32_0 = arith.constant 0 : i32
    %c0_i32_1 = arith.constant 0 : i32
    return %c0_i32, %c0_i32_0 : i32, i32
  }
  func.func @transform_7(%arg0: i32) -> (i32, i32) {
    %c0_i32 = arith.constant 0 : i32
    %c0_i32_0 = arith.constant 0 : i32
    %c0_i32_1 = arith.constant 0 : i32
    return %c0_i32, %c0_i32_0 : i32, i32
  }
  func.func @transform_8(%arg0: i32) -> (i32, i32) {
    %c0_i32 = arith.constant 0 : i32
    %c0_i32_0 = arith.constant 0 : i32
    return %c0_i32, %arg0 : i32, i32
  }
}

</mosaic_0001>

<bundles_post_ra>
// kernel: tpu_custom_call.1
= control target key start
LH: loop header
LB: loop body
LE: loop exit
PB: predicated region body
PF: predicated region fallthrough
CT: control target
= control target key end

     0   :  { %13 = vsyncpa [#allocation3], 0  ;;  %s1062_s0 = inlined_call_operand.hbm [shape: f32[8,128], index: 0, kind: input, shape index: {}]   ;;  %s1063_s1 = inlined_call_operand.hbm [shape: f32[4,128], index: 1, kind: input, shape index: {}]   ;;  %s1064_s2 = inlined_call_operand.hbm [shape: f32[128,128], index: 2, kind: input, shape index: {}]   ;;  %s1065_s3 = inlined_call_operand.vmem [shape: f32[1,128], index: 3, kind: input, shape index: {}]   ;;  %s1066_s4 = inlined_call_operand.hbm [shape: f32[128,128], index: 4, kind: input, shape index: {}]   ;;  %s1067_s5 = inlined_call_operand.vmem [shape: f32[1,128], index: 5, kind: input, shape index: {}]   ;;  %s1068_s6 = inlined_call_operand.hbm [shape: f32[128,128], index: 6, kind: input, shape index: {}]   ;;  %s1069_s7 = inlined_call_operand.vmem [shape: f32[1,128], index: 7, kind: input, shape index: {}]   ;;  %s1070_s8 = inlined_call_operand.vmem [shape: f32[12,8], index: 8, kind: output, shape index: {}]  }
   0x1   :  { %14 = vsyncpa [#allocation5], 0 }
   0x2   :  { %15 = vsyncpa [#allocation8], 0  ;;  %s901_s27 = smov [#allocation4]  }
   0x3   :  { %s32_s28 = sshll.u32 %s901_s27, 4  ;;  %s33_s28 = int_to_ptr.vmem [resolvable:$true] %s32_s28 }
   0x4   :  { %s803_s29 = scalar_lea.vmem %s33_s28, 64  ;;  %p808_p1 = scmp.lt.s32.totalorder %s33_s28, %s33_s28 }
   0x5   :  { %p804_p0 = scmp.ne.s32.totalorder %s33_s28, %s803_s29  ;;  %p809_p2 = scmp.lt.s32.totalorder %s803_s29, %s803_s29 }
   0x7   :  { %p810_p3 = por %p809_p2, %p808_p1 }
   0x9   :  { %p811_p4 = pnand %p810_p3, %p804_p0 }
   0xb   :  { %814 = shalt.err (!%p811_p4)
}
   0xc   :  { %35 = dma.hbm_to_vmem [thread:$0]  %s1063_s1, 64, %s33_s28, [#allocation5]  }
   0xd   :  { %s902_s10 = smov [#allocation7]   ;;  %s903_s12 = smov [#allocation2]  }
   0xe   :  { %s55_s11 = sshll.u32 %s902_s10, 4  ;;  %s22_s13 = sshll.u32 %s903_s12, 4  ;;  %s56_s11 = int_to_ptr.vmem [resolvable:$true] %s55_s11  ;;  %s23_s13 = int_to_ptr.vmem [resolvable:$true] %s22_s13 }
   0xf   :  { %s823_s14 = scalar_lea.vmem %s56_s11, 2048  ;;  %p828_p6 = scmp.lt.s32.totalorder %s56_s11, %s56_s11 }
  0x10   :  { %p824_p5 = scmp.ne.s32.totalorder %s56_s11, %s823_s14  ;;  %p829_p7 = scmp.lt.s32.totalorder %s823_s14, %s823_s14 }
  0x12   :  { %p830_p8 = por %p829_p7, %p828_p6 }
  0x14   :  { %p831_p9 = pnand %p830_p8, %p824_p5 }
  0x16   :  { %834 = shalt.err (!%p831_p9)
}
  0x17   :  { %s904_s15 = smov 128   ;;  %s905_s16 = smov 8  }
  0x18   :  { %61 = dma.hbm_to_vmem [thread:$0]  %s1066_s4, 2048, %s56_s11, [#allocation8], %s904_s15, %s904_s15, %s905_s16  }
  0x19   :  { %s843_s1 = scalar_lea.vmem %s23_s13, 128  ;;  %p848_p11 = scmp.lt.s32.totalorder %s23_s13, %s23_s13 }
  0x1a   :  { %p844_p10 = scmp.ne.s32.totalorder %s23_s13, %s843_s1  ;;  %p849_p12 = scmp.lt.s32.totalorder %s843_s1, %s843_s1 }
  0x1c   :  { %p850_p13 = por %p849_p12, %p848_p11 }
  0x1e   :  { %p851_p0 = pnand %p850_p13, %p844_p10 }
  0x20   :  { %854 = shalt.err (!%p851_p0)
}
  0x21   :  { %25 = dma.hbm_to_vmem [thread:$0]  %s1062_s0, 128, %s23_s13, [#allocation3]  }
  0x22   :  { %s906_s21 = smov [#allocation6]   ;;  %s907_s23 = smov [#allocation9]  }
  0x23   :  { %s41_s22 = sshll.u32 %s906_s21, 4  ;;  %s69_s24 = sshll.u32 %s907_s23, 4  ;;  %s42_s22 = int_to_ptr.vmem [resolvable:$true] %s41_s22  ;;  %s70_s24 = int_to_ptr.vmem [resolvable:$true] %s69_s24 }
  0x24   :  { %s863_s25 = scalar_lea.vmem %s42_s22, 2048  ;;  %p868_p2 = scmp.lt.s32.totalorder %s42_s22, %s42_s22 }
  0x25   :  { %p864_p1 = scmp.ne.s32.totalorder %s42_s22, %s863_s25  ;;  %p869_p3 = scmp.lt.s32.totalorder %s863_s25, %s863_s25 }
  0x27   :  { %p870_p4 = por %p869_p3, %p868_p2 }
  0x29   :  { %p871_p5 = pnand %p870_p4, %p864_p1 }
  0x2b   :  { %874 = shalt.err (!%p871_p5)
}
  0x2c   :  { %47 = dma.hbm_to_vmem [thread:$0]  %s1064_s2, 2048, %s42_s22, [#allocation5], %s904_s15, %s904_s15, %s905_s16  }
  0x2d   :  { %s883_s0 = scalar_lea.vmem %s70_s24, 2048  ;;  %p888_p7 = scmp.lt.s32.totalorder %s70_s24, %s70_s24 }
  0x2e   :  { %p884_p6 = scmp.ne.s32.totalorder %s70_s24, %s883_s0  ;;  %p889_p8 = scmp.lt.s32.totalorder %s883_s0, %s883_s0 }
  0x30   :  { %p890_p9 = por %p889_p8, %p888_p7 }
  0x32   :  { %p891_p10 = pnand %p890_p9, %p884_p6 }
  0x34   :  { %894 = shalt.err (!%p891_p10)
}
  0x35   :  { %75 = dma.hbm_to_vmem [thread:$0]  %s1068_s6, 2048, %s70_s24, [#allocation8], %s904_s15, %s904_s15, %s905_s16  }
  0x36   :  { %895 = dma.done.wait [#allocation3], 128  }
  0x37   :  { %896 = vsyncadd [#allocation3], 4294967168 }
  0x38   :  { %897 = dma.done.wait [#allocation5], 2112  }
  0x39   :  { %898 = vsyncadd [#allocation5], 4294965184 }
  0x3a   :  { %899 = dma.done.wait [#allocation8], 4096  }
  0x3b   :  { %900 = vsyncadd [#allocation8], 4294963200  ;;  %v908_v0 = vmov 0.0   ;;  %vm909_vm0 = vmmov 0   ;;  %v110_v1 = vld [vmem:[#allocation6 + $0x78] sm:$0xff]  ;;  %v109_v2 = vld [vmem:[#allocation6 + $0x70] sm:$0xff] }
  0x3c   :  { %666 = vmatprep.subr.mxu0 %v908_v0  ;;  %698 = vmatprep.mubr.msk.f32.mxu0 %vm909_vm0, %v908_v0  ;;  %v108_v3 = vld [vmem:[#allocation6 + $0x68] sm:$0xff]  ;;  %v107_v4 = vld [vmem:[#allocation6 + $0x60] sm:$0xff]  ;;  %v106_v5 = vld [vmem:[#allocation6 + $0x58] sm:$0xff]  ;;  %vm593_vm1 = vcmask 1043456   ;;  %vm595_vm2 = vcmask 64512   ;;  %vm597_vm3 = vcmask 60416  }
  0x3d   :  { %701 = vmatprep.subr.mxu1 %v908_v0  ;;  %703 = vmatprep.mubr.msk.f32.mxu1 %vm909_vm0, %v908_v0  ;;  %v105_v6 = vld [vmem:[#allocation6 + $0x50] sm:$0xff]  ;;  %v104_v7 = vld [vmem:[#allocation6 + $0x48] sm:$0xff]  ;;  %v103_v8 = vld [vmem:[#allocation6 + $0x40] sm:$0xff] }
  0x3e   :  { %667 = vmatpush3.msra.mxu0 %v110_v1  ;;  %v102_v9 = vld [vmem:[#allocation6 + $0x38] sm:$0xff]  ;;  %v101_v10 = vld [vmem:[#allocation6 + $0x30] sm:$0xff]  ;;  %v100_v11 = vld [vmem:[#allocation6 + $0x28] sm:$0xff] }
  0x3f   :  { %668 = vmatprep.subr.mxu0 %v908_v0  ;;  %v99_v12 = vld [vmem:[#allocation6 + $0x20] sm:$0xff]  ;;  %v98_v13 = vld [vmem:[#allocation6 + $0x18] sm:$0xff]  ;;  %v97_v14 = vld [vmem:[#allocation6 + $0x10] sm:$0xff] }
  0x40   :  { %669 = vmatpush3.msra.mxu0 %v109_v2  ;;  %v96_v15 = vld [vmem:[#allocation6 + $0x8] sm:$0xff]  ;;  %v95_v16 = vld [vmem:[#allocation6] sm:$0xff]  ;;  %v94_v17 = vld [vmem:[#allocation2] sm:$0xff] }
  0x41   :  { %670 = vmatprep.subr.mxu0 %v908_v0  ;;  %v606_v18 = vld [vmem:[%s1065_s3] ss:$0 sm:$0xff]  ;;  %v1006_v24 = vld [vmem:[#allocation4] sm:$0xf]  ;;  %v273_v27 = vld [vmem:[#allocation7 + $0x68] sm:$0xff] }
  0x42   :  { %671 = vmatpush3.msra.mxu0 %v108_v3  ;;  %v275_v25 = vld [vmem:[#allocation7 + $0x78] sm:$0xff]  ;;  %v274_v26 = vld [vmem:[#allocation7 + $0x70] sm:$0xff]  ;;  %v272_v28 = vld [vmem:[#allocation7 + $0x60] sm:$0xff] }
  0x43   :  { %672 = vmatprep.subr.mxu0 %v908_v0  ;;  %v271_v29 = vld [vmem:[#allocation7 + $0x58] sm:$0xff]  ;;  %v270_v30 = vld [vmem:[#allocation7 + $0x50] sm:$0xff]  ;;  %v269_v31 = vld [vmem:[#allocation7 + $0x48] sm:$0xff] }
  0x44   :  { %673 = vmatpush3.msra.mxu0 %v107_v4  ;;  %v268_v32 = vld [vmem:[#allocation7 + $0x40] sm:$0xff]  ;;  %v267_v33 = vld [vmem:[#allocation7 + $0x38] sm:$0xff]  ;;  %v266_v34 = vld [vmem:[#allocation7 + $0x30] sm:$0xff] }
  0x45   :  { %674 = vmatprep.subr.mxu0 %v908_v0  ;;  %v265_v35 = vld [vmem:[#allocation7 + $0x28] sm:$0xff]  ;;  %v264_v36 = vld [vmem:[#allocation7 + $0x20] sm:$0xff]  ;;  %v263_v37 = vld [vmem:[#allocation7 + $0x18] sm:$0xff] }
  0x46   :  { %675 = vmatpush3.msra.mxu0 %v106_v5  ;;  %v262_v38 = vld [vmem:[#allocation7 + $0x10] sm:$0xff]  ;;  %v261_v39 = vld [vmem:[#allocation7 + $0x8] sm:$0xff]  ;;  %v260_v40 = vld [vmem:[#allocation7] sm:$0xff] }
  0x47   :  { %676 = vmatprep.subr.mxu0 %v908_v0  ;;  %v440_v41 = vld [vmem:[#allocation9 + $0x78] sm:$0xff]  ;;  %v439_v42 = vld [vmem:[#allocation9 + $0x70] sm:$0xff]  ;;  %v438_v43 = vld [vmem:[#allocation9 + $0x68] sm:$0xff] }
  0x48   :  { %677 = vmatpush3.msra.mxu0 %v105_v6  ;;  %v437_v44 = vld [vmem:[#allocation9 + $0x60] sm:$0xff]  ;;  %v436_v45 = vld [vmem:[#allocation9 + $0x58] sm:$0xff]  ;;  %v435_v46 = vld [vmem:[#allocation9 + $0x50] sm:$0xff] }
  0x49   :  { %678 = vmatprep.subr.mxu0 %v908_v0  ;;  %v434_v47 = vld [vmem:[#allocation9 + $0x48] sm:$0xff]  ;;  %v433_v48 = vld [vmem:[#allocation9 + $0x40] sm:$0xff]  ;;  %v432_v49 = vld [vmem:[#allocation9 + $0x38] sm:$0xff] }
  0x4a   :  { %679 = vmatpush3.msra.mxu0 %v104_v7  ;;  %v431_v50 = vld [vmem:[#allocation9 + $0x30] sm:$0xff]  ;;  %v430_v51 = vld [vmem:[#allocation9 + $0x28] sm:$0xff]  ;;  %v429_v52 = vld [vmem:[#allocation9 + $0x20] sm:$0xff] }
  0x4b   :  { %680 = vmatprep.subr.mxu0 %v908_v0  ;;  %v428_v53 = vld [vmem:[#allocation9 + $0x18] sm:$0xff]  ;;  %v427_v54 = vld [vmem:[#allocation9 + $0x10] sm:$0xff]  ;;  %v426_v55 = vld [vmem:[#allocation9 + $0x8] sm:$0xff] }
  0x4c   :  { %681 = vmatpush3.msra.mxu0 %v103_v8  ;;  %v425_v56 = vld [vmem:[#allocation9] sm:$0xff]  ;;  %v607_v59 = vld [vmem:[%s1067_s5] ss:$0 sm:$0xff] }
  0x4d   :  { %682 = vmatprep.subr.mxu0 %v908_v0  ;;  %v608_v2 = vld [vmem:[%s1069_s7] ss:$0 sm:$0xff] }
  0x4e   :  { %683 = vmatpush3.msra.mxu0 %v102_v9 }
  0x4f   :  { %684 = vmatprep.subr.mxu0 %v908_v0 }
  0x50   :  { %685 = vmatpush3.msra.mxu0 %v101_v10 }
  0x51   :  { %686 = vmatprep.subr.mxu0 %v908_v0 }
  0x52   :  { %687 = vmatpush3.msra.mxu0 %v100_v11 }
  0x53   :  { %688 = vmatprep.subr.mxu0 %v908_v0 }
  0x54   :  { %689 = vmatpush3.msra.mxu0 %v99_v12 }
  0x55   :  { %690 = vmatprep.subr.mxu0 %v908_v0 }
  0x56   :  { %691 = vmatpush3.msra.mxu0 %v98_v13 }
  0x57   :  { %692 = vmatprep.subr.mxu0 %v908_v0 }
  0x58   :  { %693 = vmatpush3.msra.mxu0 %v97_v14 }
  0x59   :  { %694 = vmatprep.subr.mxu0 %v908_v0 }
  0x5a   :  { %695 = vmatpush3.msra.mxu0 %v96_v15 }
  0x5b   :  { %696 = vmatprep.subr.mxu0 %v908_v0 }
  0x5c   :  { %697 = vmatpush3.msra.mxu0 %v95_v16 }
  0x5d   :  { %699 = vmatmul.mubr.f32.vlgmr.msra.gmra.mxu0 %v94_v17  ;;  %746 = vmatprep.subr.mxu0 %v908_v0 }
  0x5e   :  { %778 = vmatprep.mubr.msk.f32.mxu0 %vm909_vm0, %v908_v0  ;;  %747 = vmatpush3.msra.mxu0 %v440_v41 }
  0x5f   :  { %748 = vmatprep.subr.mxu0 %v908_v0 }
  0x60   :  { %749 = vmatpush3.msra.mxu0 %v439_v42 }
  0x61   :  { %750 = vmatprep.subr.mxu0 %v908_v0 }
  0x62   :  { %751 = vmatpush3.msra.mxu0 %v438_v43 }
  0x63   :  { %752 = vmatprep.subr.mxu0 %v908_v0 }
  0x64   :  { %753 = vmatpush3.msra.mxu0 %v437_v44 }
  0x65   :  { %754 = vmatprep.subr.mxu0 %v908_v0 }
  0x66   :  { %755 = vmatpush3.msra.mxu0 %v436_v45 }
  0x67   :  { %756 = vmatprep.subr.mxu0 %v908_v0 }
  0x68   :  { %757 = vmatpush3.msra.mxu0 %v435_v46 }
  0x69   :  { %758 = vmatprep.subr.mxu0 %v908_v0 }
  0x6a   :  { %759 = vmatpush3.msra.mxu0 %v434_v47 }
  0x6b   :  { %760 = vmatprep.subr.mxu0 %v908_v0 }
  0x6c   :  { %761 = vmatpush3.msra.mxu0 %v433_v48 }
  0x6d   :  { %762 = vmatprep.subr.mxu0 %v908_v0 }
  0x6e   :  { %763 = vmatpush3.msra.mxu0 %v432_v49 }
  0x6f   :  { %764 = vmatprep.subr.mxu0 %v908_v0 }
  0x70   :  { %765 = vmatpush3.msra.mxu0 %v431_v50 }
  0x71   :  { %766 = vmatprep.subr.mxu0 %v908_v0 }
  0x72   :  { %767 = vmatpush3.msra.mxu0 %v430_v51 }
  0x73   :  { %768 = vmatprep.subr.mxu0 %v908_v0 }
  0x74   :  { %769 = vmatpush3.msra.mxu0 %v429_v52 }
  0x75   :  { %770 = vmatprep.subr.mxu0 %v908_v0 }
  0x76   :  { %771 = vmatpush3.msra.mxu0 %v428_v53 }
  0x77   :  { %772 = vmatprep.subr.mxu0 %v908_v0 }
  0x78   :  { %773 = vmatpush3.msra.mxu0 %v427_v54 }
  0x79   :  { %774 = vmatprep.subr.mxu0 %v908_v0 }
  0x7a   :  { %775 = vmatpush3.msra.mxu0 %v426_v55 }
  0x7b   :  { %776 = vmatprep.subr.mxu0 %v908_v0 }
  0x7c   :  { %777 = vmatpush3.msra.mxu0 %v425_v56 }
 0x11d   :  { %v184_v19 = vpop.f32.mrf.mxu0 }
 0x11e   :  { %v185_v20 = vadd.f32 %v606_v18, %v184_v19 }
 0x11f   :  { %v700_v21 = vpop.f32.mrf.mxu0 }
 0x120   :  { %v188_v22 = vmul.f32 0.01, %v185_v20 }
 0x122   :  { %v189_v23 = vmax.f32 %v185_v20, %v188_v22 }
 0x124   :  { %702 = vmatpush3.xpose.msra.mxu1 %v189_v23 }
 0x125   :  { %706 = vmatprep.subr.mxu1 %v908_v0 }
 0x127   :  { %704 = vmatmul.mubr.f32.vlgmr.msra.gmra.mxu1 %v1006_v24 }
 0x128   :  { %707 = vmatpush3.msra.mxu1 %v275_v25  ;;  %738 = vmatprep.mubr.msk.f32.mxu1 %vm909_vm0, %v908_v0 }
 0x129   :  { %708 = vmatprep.subr.mxu1 %v908_v0 }
 0x12a   :  { %709 = vmatpush3.msra.mxu1 %v274_v26 }
 0x12b   :  { %710 = vmatprep.subr.mxu1 %v908_v0 }
 0x12c   :  { %711 = vmatpush3.msra.mxu1 %v273_v27 }
 0x12d   :  { %712 = vmatprep.subr.mxu1 %v908_v0 }
 0x12e   :  { %713 = vmatpush3.msra.mxu1 %v272_v28 }
 0x12f   :  { %714 = vmatprep.subr.mxu1 %v908_v0 }
 0x130   :  { %715 = vmatpush3.msra.mxu1 %v271_v29 }
 0x131   :  { %716 = vmatprep.subr.mxu1 %v908_v0 }
 0x132   :  { %717 = vmatpush3.msra.mxu1 %v270_v30 }
 0x133   :  { %718 = vmatprep.subr.mxu1 %v908_v0 }
 0x134   :  { %719 = vmatpush3.msra.mxu1 %v269_v31 }
 0x135   :  { %720 = vmatprep.subr.mxu1 %v908_v0 }
 0x136   :  { %721 = vmatpush3.msra.mxu1 %v268_v32 }
 0x137   :  { %722 = vmatprep.subr.mxu1 %v908_v0 }
 0x138   :  { %723 = vmatpush3.msra.mxu1 %v267_v33 }
 0x139   :  { %724 = vmatprep.subr.mxu1 %v908_v0 }
 0x13a   :  { %725 = vmatpush3.msra.mxu1 %v266_v34 }
 0x13b   :  { %726 = vmatprep.subr.mxu1 %v908_v0 }
 0x13c   :  { %727 = vmatpush3.msra.mxu1 %v265_v35 }
 0x13d   :  { %728 = vmatprep.subr.mxu1 %v908_v0 }
 0x13e   :  { %729 = vmatpush3.msra.mxu1 %v264_v36 }
 0x13f   :  { %730 = vmatprep.subr.mxu1 %v908_v0 }
 0x140   :  { %731 = vmatpush3.msra.mxu1 %v263_v37 }
 0x141   :  { %732 = vmatprep.subr.mxu1 %v908_v0 }
 0x142   :  { %733 = vmatpush3.msra.mxu1 %v262_v38 }
 0x143   :  { %734 = vmatprep.subr.mxu1 %v908_v0 }
 0x144   :  { %735 = vmatpush3.msra.mxu1 %v261_v39 }
 0x145   :  { %736 = vmatprep.subr.mxu1 %v908_v0 }
 0x146   :  { %737 = vmatpush3.msra.mxu1 %v260_v40 }
 0x147   :  { %739 = vmatmul.mubr.f32.vlgmr.msra.gmra.mxu1 %v189_v23  ;;  %741 = vmatprep.subr.mxu1 %v908_v0 }
 0x148   :  { %743 = vmatprep.mubr.msk.f32.mxu1 %vm909_vm0, %v908_v0 }
 0x1e7   :  { %v256_v57 = vpop.f32.mrf.mxu1 }
 0x1e9   :  { %v705_v58 = vpop.f32.mrf.mxu1 }
 0x207   :  { %v349_v60 = vpop.f32.mrf.mxu1 }
 0x208   :  { %v350_v61 = vadd.f32 %v607_v59, %v349_v60 }
 0x209   :  { %v740_v62 = vpop.f32.mrf.mxu1 }
 0x20a   :  { %v353_v63 = vmul.f32 0.01, %v350_v61 }
 0x20c   :  { %v354_v1 = vmax.f32 %v350_v61, %v353_v63 }
 0x20e   :  { %742 = vmatpush3.xpose.msra.mxu1 %v354_v1  ;;  %779 = vmatmul.mubr.f32.vlgmr.msra.gmra.mxu0 %v354_v1 }
 0x20f   :  { %781 = vmatprep.subr.mxu1 %v908_v0 }
 0x211   :  { %744 = vmatmul.mubr.f32.vlgmr.msra.gmra.mxu1 %v1006_v24 }
 0x212   :  { %783 = vmatprep.mubr.msk.f32.mxu1 %vm909_vm0, %v908_v0 }
 0x2ce   :  { %v514_v3 = vpop.f32.mrf.mxu0 }
 0x2cf   :  { %v515_v4 = vadd.f32 %v608_v2, %v514_v3 }
 0x2d0   :  { %v780_v5 = vpop.f32.mrf.mxu0 }
 0x2d1   :  { %v518_v6 = vmul.f32 0.01, %v515_v4  ;;  %v421_v7 = vpop.f32.mrf.mxu1 }
 0x2d2   :  { %v591_v8 = vrot.slane %v421_v7, 4 }
 0x2d3   :  { %v519_v9 = vmax.f32 %v515_v4, %v518_v6  ;;  %v745_v10 = vpop.f32.mrf.mxu1 }
 0x2d4   :  { %v594_v11 = vsel %vm593_vm1, %v256_v57, %v591_v8 }
 0x2d5   :  { %596 = vst.msk [vmem:[%s1070_s8] sm:$0xff] %vm595_vm2, %v594_v11  ;;  %782 = vmatpush3.xpose.msra.mxu1 %v519_v9 }
 0x2d8   :  { %784 = vmatmul.mubr.f32.vlgmr.msra.gmra.mxu1 %v1006_v24 }
 0x398   :  { %v586_v0 = vpop.f32.mrf.mxu1 }
 0x399   :  { %598 = vst.msk [vmem:[%s1070_s8 + $0x8] sm:$0xf] %vm597_vm3, %v586_v0 }
 0x39a   :  { %v785_v12 = vpop.f32.mrf.mxu1 }
 0x39b   :  { %603 = vsyncpa [#allocation3], 1 }
 0x39c   :  { %604 = vsyncpa [#allocation5], 1 }
 0x39d   :  { %605 = vsyncpa [#allocation8], 1 }

</bundles_post_ra>
